<compile_context>
chip_gen: v6e
topology: v6e:2x2x1
jax: 0.10.0
libtpu: 0.0.40
codegen_flags: <defaults>
</compile_context>

<pallas_src>
import functools

import jax
import jax.numpy as jnp
from jax.experimental import pallas as pl
from jax.experimental.pallas import tpu as pltpu

# Lane-chunk per grid step: 32768 f32 lanes = 128 KiB of data per input block.
MAX_BLOCK_LANES = 32768


def _per_atom_energy_rmse_kernel(pred_ref, true_ref, n_ref, out_ref, acc_ref,
                                 *, num_structures: int, block_lanes: int):
    step = pl.program_id(0)

    @pl.when(step == 0)
    def _init():
        acc_ref[...] = jnp.zeros_like(acc_ref)

    pred = pred_ref[...].astype(jnp.float32)
    true = true_ref[...].astype(jnp.float32)
    n = n_ref[...].astype(jnp.float32)

    # Mask the (possibly) ragged tail of the last block: out-of-bounds lanes
    # hold unspecified data, so force their contribution to exactly zero.
    col = step * block_lanes + jax.lax.broadcasted_iota(jnp.int32, pred.shape, 1)
    valid = col < num_structures

    # Fused residual with a single exact divide (n forced to 1 on masked lanes).
    diff = jnp.where(valid, pred - true, 0.0) / jnp.where(valid, n, 1.0)

    # Pure VPU element-wise accumulation (no per-step cross-lane reduction).
    acc_ref[...] += diff * diff

    @pl.when(step == pl.num_programs(0) - 1)
    def _finalize():
        # Single cross-lane reduce, mean over the *true* structure count, sqrt.
        mse = jnp.sum(acc_ref[...], keepdims=True) * (1.0 / num_structures)
        out_ref[...] = jnp.sqrt(mse)


def per_atom_energy_rmse(pred_energy, true_energy, n_atoms_per_structure):
    """PerAtomEnergyLoss('energy', RMSE()) forward.

    pred_energy, true_energy: (S,) float — total energy per structure.
    n_atoms_per_structure:    (S,) int   — atom count per structure.
    Returns a scalar f32 loss.
    """
    S = int(pred_energy.shape[0])
    block_lanes = min(S, MAX_BLOCK_LANES)
    grid = pl.cdiv(S, block_lanes)

    # Free metadata-only views; no padding, no copies.
    pred2 = pred_energy.reshape(1, S)
    true2 = true_energy.reshape(1, S)
    n2 = n_atoms_per_structure.reshape(1, S)

    bytes_accessed = (pred2.size * pred2.dtype.itemsize
                      + true2.size * true2.dtype.itemsize
                      + n2.size * n2.dtype.itemsize
                      + 4)

    kernel = functools.partial(_per_atom_energy_rmse_kernel,
                               num_structures=S, block_lanes=block_lanes)

    out = pl.pallas_call(
        kernel,
        out_shape=jax.ShapeDtypeStruct((1, 1), jnp.float32),
        grid=(grid,),
        in_specs=[
            pl.BlockSpec((1, block_lanes), lambda i: (0, i)),
            pl.BlockSpec((1, block_lanes), lambda i: (0, i)),
            pl.BlockSpec((1, block_lanes), lambda i: (0, i)),
        ],
        out_specs=pl.BlockSpec((1, 1), lambda i: (0, 0)),
        scratch_shapes=[pltpu.VMEM((1, block_lanes), jnp.float32)],
        compiler_params=pltpu.CompilerParams(
            dimension_semantics=("arbitrary",)),
        cost_estimate=pl.CostEstimate(
            flops=5 * S, transcendentals=1, bytes_accessed=bytes_accessed),
    )(pred2, true2, n2)
    return out[0, 0]


if __name__ == "__main__":
    key = jax.random.PRNGKey(0)

    def make_batch(k, S):
        k1, k2, k3 = jax.random.split(k, 3)
        n_atoms = jax.random.randint(k1, (S,), minval=1, maxval=20, dtype=jnp.int32)
        true_energy = (-1.5 * n_atoms.astype(jnp.float32)
                       + jax.random.normal(k2, (S,), dtype=jnp.float32))
        pred_energy = true_energy + 0.1 * jax.random.normal(k3, (S,), dtype=jnp.float32)
        return pred_energy, true_energy, n_atoms

    def reference(pred_energy, true_energy, n_atoms):
        pa_pred = pred_energy / n_atoms.astype(jnp.float32)
        pa_true = true_energy / n_atoms.astype(jnp.float32)
        return jnp.sqrt(jnp.mean((pa_pred - pa_true) ** 2))

    # Primary small-batch check (S = 8 structures, grid = 1 single-block path).
    k_small, k_big = jax.random.split(key, 2)
    pred, true, n_atoms = make_batch(k_small, 8)
    loss = jax.block_until_ready(per_atom_energy_rmse(pred, true, n_atoms))
    ref = reference(pred, true, n_atoms)
    assert jnp.allclose(loss, ref, rtol=1e-5, atol=1e-6), (loss, ref)

    # Secondary check exercising the multi-step grid + ragged-tail masking.
    pred_b, true_b, n_atoms_b = make_batch(k_big, 40000)
    loss_b = jax.block_until_ready(per_atom_energy_rmse(pred_b, true_b, n_atoms_b))
    ref_b = reference(pred_b, true_b, n_atoms_b)
    assert jnp.allclose(loss_b, ref_b, rtol=1e-4, atol=1e-6), (loss_b, ref_b)

    print("KERNEL_OK")
</pallas_src>

<mosaic_0001>
module attributes {stable_mosaic.version = 11 : i64} {
  func.func @_per_atom_energy_rmse_kernel(%arg0: i32, %arg1: memref<1x8xf32, #tpu.memory_space<vmem>>, %arg2: memref<1x8xf32, #tpu.memory_space<vmem>>, %arg3: memref<1x8xi32, #tpu.memory_space<vmem>>, %arg4: memref<1x1xf32, #tpu.memory_space<vmem>>, %arg5: memref<1x8xf32, #tpu.memory_space<vmem>>) attributes {dimension_semantics = [#tpu.dimension_semantics<arbitrary>], iteration_bounds = array<i64: 1>, scalar_prefetch = 0 : i64, scratch_operands = 1 : i64, tpu.core_type = #tpu.core_type<tc>, window_params = [{transform_indices = @transform_0, window_bounds = array<i64: 1, 8>}, {transform_indices = @transform_1, window_bounds = array<i64: 1, 8>}, {transform_indices = @transform_2, window_bounds = array<i64: 1, 8>}, {pipeline_mode = #tpu.pipeline_mode<synchronous>, transform_indices = @transform_3, window_bounds = array<i64: 1, 1>}]} {
    %c0_i32 = arith.constant 0 : i32
    %0 = arith.cmpi eq, %arg0, %c0_i32 : i32
    %1 = arith.extui %0 : i1 to i32
    %c0_i32_0 = arith.constant 0 : i32
    %2 = arith.cmpi ne, %1, %c0_i32_0 : i32
    scf.if %2 {
      %cst_14 = arith.constant 0.000000e+00 : f32
      %26 = vector.broadcast %cst_14 : f32 to vector<1x8xf32>
      %c0_15 = arith.constant 0 : index
      %c0_16 = arith.constant 0 : index
      %27 = vector.load %arg5[%c0_15, %c0_16] : memref<1x8xf32, #tpu.memory_space<vmem>>, vector<1x8xf32>
      tpu.vector_store %arg5[%c0_15, %c0_16], %26 {strides = array<i32>} : memref<1x8xf32, #tpu.memory_space<vmem>>, vector<1x8xf32>,
    } else {
    }
    %c0 = arith.constant 0 : index
    %c0_1 = arith.constant 0 : index
    %3 = vector.load %arg1[%c0, %c0_1] : memref<1x8xf32, #tpu.memory_space<vmem>>, vector<1x8xf32>
    %c0_2 = arith.constant 0 : index
    %c0_3 = arith.constant 0 : index
    %4 = vector.load %arg2[%c0_2, %c0_3] : memref<1x8xf32, #tpu.memory_space<vmem>>, vector<1x8xf32>
    %c0_4 = arith.constant 0 : index
    %c0_5 = arith.constant 0 : index
    %5 = vector.load %arg3[%c0_4, %c0_5] : memref<1x8xi32, #tpu.memory_space<vmem>>, vector<1x8xi32>
    %6 = arith.sitofp %5 : vector<1x8xi32> to vector<1x8xf32>
    %c8_i32 = arith.constant 8 : i32
    %7 = arith.muli %arg0, %c8_i32 : i32
    %8 = tpu.iota {dimensions = array<i32: 1>} : vector<1x8xi32>
    %9 = vector.broadcast %7 : i32 to vector<1x8xi32>
    %10 = arith.addi %9, %8 : vector<1x8xi32>
    %c8_i32_6 = arith.constant 8 : i32
    %11 = vector.broadcast %c8_i32_6 : i32 to vector<1x8xi32>
    %12 = arith.cmpi slt, %10, %11 : vector<1x8xi32>
    %13 = arith.subf %3, %4 : vector<1x8xf32>
    %cst = arith.constant 0.000000e+00 : f32
    %14 = vector.broadcast %cst : f32 to vector<1x8xf32>
    %15 = arith.select %12, %13, %14 : vector<1x8xi1>, vector<1x8xf32>
    %cst_7 = arith.constant 1.000000e+00 : f32
    %16 = vector.broadcast %cst_7 : f32 to vector<1x8xf32>
    %17 = arith.select %12, %6, %16 : vector<1x8xi1>, vector<1x8xf32>
    %18 = arith.divf %15, %17 : vector<1x8xf32>
    %c0_8 = arith.constant 0 : index
    %c0_9 = arith.constant 0 : index
    %19 = vector.load %arg5[%c0_8, %c0_9] : memref<1x8xf32, #tpu.memory_space<vmem>>, vector<1x8xf32>
    %20 = arith.mulf %18, %18 : vector<1x8xf32>
    %21 = arith.addf %19, %20 : vector<1x8xf32>
    %c0_10 = arith.constant 0 : index
    %c0_11 = arith.constant 0 : index
    %22 = vector.load %arg5[%c0_10, %c0_11] : memref<1x8xf32, #tpu.memory_space<vmem>>, vector<1x8xf32>
    tpu.vector_store %arg5[%c0_10, %c0_11], %21 {strides = array<i32>} : memref<1x8xf32, #tpu.memory_space<vmem>>, vector<1x8xf32>,
    %c0_i32_12 = arith.constant 0 : i32
    %23 = arith.cmpi eq, %arg0, %c0_i32_12 : i32
    %24 = arith.extui %23 : i1 to i32
    %c0_i32_13 = arith.constant 0 : i32
    %25 = arith.cmpi ne, %24, %c0_i32_13 : i32
    scf.if %25 {
      %c0_14 = arith.constant 0 : index
      %c0_15 = arith.constant 0 : index
      %26 = vector.load %arg5[%c0_14, %c0_15] : memref<1x8xf32, #tpu.memory_space<vmem>>, vector<1x8xf32>
      %27 = vector.shape_cast %26 : vector<1x8xf32> to vector<1x1x8xf32>
      %cst_16 = arith.constant dense<0.000000e+00> : vector<1xf32>
      %28 = vector.multi_reduction <add>, %27, %cst_16 [1, 2] : vector<1x1x8xf32> to vector<1xf32>
      %29 = vector.shape_cast %28 : vector<1xf32> to vector<1x1x1xf32>
      %30 = vector.extract %29[0, 0, 0] : f32 from vector<1x1x1xf32>
      %31 = vector.broadcast %30 : f32 to vector<1x1xf32>
      %cst_17 = arith.constant 1.250000e-01 : f32
      %32 = vector.broadcast %cst_17 : f32 to vector<1x1xf32>
      %33 = arith.mulf %31, %32 : vector<1x1xf32>
      %34 = math.sqrt %33 : vector<1x1xf32>
      %c0_18 = arith.constant 0 : index
      %c0_19 = arith.constant 0 : index
      %35 = vector.load %arg4[%c0_18, %c0_19] : memref<1x1xf32, #tpu.memory_space<vmem>>, vector<1x1xf32>
      tpu.vector_store %arg4[%c0_18, %c0_19], %34 {strides = array<i32>} : memref<1x1xf32, #tpu.memory_space<vmem>>, vector<1x1xf32>,
    } else {
    }
    return
  }
  func.func @transform_0(%arg0: i32) -> (i32, i32) {
    %c0_i32 = arith.constant 0 : i32
    %c0_i32_0 = arith.constant 0 : i32
    return %c0_i32, %arg0 : i32, i32
  }
  func.func @transform_1(%arg0: i32) -> (i32, i32) {
    %c0_i32 = arith.constant 0 : i32
    %c0_i32_0 = arith.constant 0 : i32
    return %c0_i32, %arg0 : i32, i32
  }
  func.func @transform_2(%arg0: i32) -> (i32, i32) {
    %c0_i32 = arith.constant 0 : i32
    %c0_i32_0 = arith.constant 0 : i32
    return %c0_i32, %arg0 : i32, i32
  }
  func.func @transform_3(%arg0: i32) -> (i32, i32) {
    %c0_i32 = arith.constant 0 : i32
    %c0_i32_0 = arith.constant 0 : i32
    %c0_i32_1 = arith.constant 0 : i32
    return %c0_i32, %c0_i32_0 : i32, i32
  }
}

</mosaic_0001>

<bundles_post_ra>
// kernel: tpu_custom_call.1
= control target key start
LH: loop header
LB: loop body
LE: loop exit
PB: predicated region body
PF: predicated region fallthrough
CT: control target
= control target key end

     0   :  { %8 = vsyncpa [#allocation4], 0  ;;  %s184_s0 = inlined_call_operand.hbm [shape: f32[1,8], index: 0, kind: input, shape index: {}]   ;;  %s185_s1 = inlined_call_operand.vmem [shape: f32[1,8], index: 1, kind: input, shape index: {}]   ;;  %s186_s2 = inlined_call_operand.vmem [shape: s32[1,8], index: 2, kind: input, shape index: {}]   ;;  %s187_s3 = inlined_call_operand.hbm [shape: f32[1,1], index: 3, kind: output, shape index: {}]  }
   0x1   :  { %9 = vsyncpa [#allocation5], 0  ;;  %s146_s12 = smov [#allocation3]  }
   0x2   :  { %s16_s13 = sshll.u32 %s146_s12, 4  ;;  %s17_s13 = int_to_ptr.vmem [resolvable:$true] %s16_s13 }
   0x3   :  { %s110_s14 = scalar_lea.vmem %s17_s13, 16  ;;  %s114_s15 = scalar_lea.vmem %s17_s13, 32 }
   0x4   :  { %p111_p0 = scmp.ne.s32.totalorder %s17_s13, %s110_s14  ;;  %p115_p1 = scmp.lt.s32.totalorder %s17_s13, %s17_s13 }
   0x5   :  { %p116_p2 = scmp.lt.s32.totalorder %s114_s15, %s110_s14 }
   0x7   :  { %p117_p3 = por %p116_p2, %p115_p1 }
   0x9   :  { %p118_p4 = pnand %p117_p3, %p111_p0 }
   0xb   :  { %121 = shalt.err (!%p118_p4)
}
   0xc   :  { %19 = dma.hbm_to_vmem [thread:$0]  %s184_s0, 16, %s17_s13, [#allocation4]  }
   0xd   :  { %142 = dma.done.wait [#allocation4], 16  }
   0xe   :  { %143 = vsyncadd [#allocation4], 4294967280  ;;  %vm31_vm0 = vcmask 57344   ;;  %v38_v0 = vlaneseq  ;;  %v147_v1 = vmov 0.0   ;;  %v35_v3 = vld [vmem:[%s186_s2] sm:$0x1] }
   0xf   :  { %32 = vst.msk [vmem:[#allocation2] sm:$0x1] %vm31_vm0, %v147_v1  ;;  %v36_v4 = vcvt.s32.f32 %v35_v3  ;;  %v33_v6 = vld [vmem:[#allocation3] sm:$0x1]  ;;  %v34_v7 = vld [vmem:[%s185_s1] sm:$0x1] }
  0x10   :  { %v39_v2 = vand.u32 127, %v38_v0  ;;  %v43_v8 = vsub.f32 %v33_v6, %v34_v7  ;;  %s148_s1 = smov [#allocation6]   ;;  %vm76_vm3 = vcmask 0  }
  0x11   :  { %s84_s2 = sshll.u32 %s148_s1, 4  ;;  %s85_s2 = int_to_ptr.vmem [resolvable:$true] %s84_s2 }
  0x12   :  { %vm42_vm1 = vcmp.lt.s32.totalorder %v39_v2, 8  ;;  %s122_s22 = scalar_lea.vmem %s85_s2, 16  ;;  %s126_s23 = scalar_lea.vmem %s85_s2, 32 }
  0x13   :  { %v45_v5 = vsel %vm42_vm1, %v36_v4, 1.0  ;;  %v44_v9 = vsel %vm42_vm1, %v43_v8, 0.0  ;;  %p123_p5 = scmp.ne.s32.totalorder %s85_s2, %s122_s22  ;;  %p127_p6 = scmp.lt.s32.totalorder %s85_s2, %s85_s2 }
  0x14   :  { %98 = vrcp.f32 %v45_v5  ;;  %p128_p7 = scmp.lt.s32.totalorder %s126_s23, %s122_s22 }
  0x16   :  { %v48_v12 = vld [vmem:[#allocation2] sm:$0x1]  ;;  %p129_p8 = por %p128_p7, %p127_p6 }
  0x18   :  { %p130_p9 = pnand %p129_p8, %p123_p5 }
  0x21   :  { %v99_v10 = vpop.eup %98 }
  0x22   :  { %v47_v11 = vmul.f32 %v99_v10, %v44_v9 }
  0x24   :  { %v49_v13 = vmul.f32 %v47_v11, %v47_v11 }
  0x26   :  { %v50_v14 = vadd.f32 %v49_v13, %v48_v12 }
  0x28   :  { %52 = vst.msk [vmem:[#allocation2] sm:$0x1] %vm31_vm0, %v50_v14 }
  0x2f   :  { %v56_v15 = vld [vmem:[#allocation2] sm:$0x1] }
  0x30   :  { %v57_v16 = vsel %vm31_vm0, %v56_v15, 0.0 }
  0x31   :  { %58 = vadd.xlane.f32.xlu0 %v57_v16 }
  0xba   :  { %v59_v17 = vpop.xlane.xlu0 %58 }
  0xbb   :  { %v60_v18 = vrot.slane %v59_v17, 4 }
  0xbd   :  { %v61_v19 = vadd.f32 %v60_v18, %v59_v17 }
  0xbf   :  { %v62_v20 = vrot.slane %v61_v19, 2 }
  0xc1   :  { %v63_v21 = vadd.f32 %v62_v20, %v61_v19 }
  0xc3   :  { %v64_v22 = vrot.slane %v63_v21, 1 }
  0xc5   :  { %v65_v23 = vadd.f32 %v64_v22, %v63_v21 }
  0xc7   :  { %93 = vpush %v65_v23 }
  0xf8   :  { %s94_s0 = spop %93 }
  0xf9   :  { %v67_v24 = vstv %s94_s0 }
  0xfa   :  { %v68_v25 = vmul.f32 0.125, %v67_v24 }
  0xfc   :  { %100 = vrsqrt.f32 %v68_v25  ;;  %vm71_vm2 = vcmp.eq.f32.partialorder %v68_v25, inf  ;;  %v74_v28 = vand.u32 2147483648, %v68_v25  ;;  %vm73_vm4 = vcmp.eq.f32.partialorder %v68_v25, 0.0 }
 0x109   :  { %v101_v26 = vpop.eup %100 }
 0x10a   :  { %v70_v27 = vmul.f32 %v101_v26, %v68_v25 }
 0x10c   :  { %v72_v29 = vsel %vm71_vm2, %v68_v25, %v70_v27 }
 0x10d   :  { %v75_v30 = vsel %vm73_vm4, %v74_v28, %v72_v29 }
 0x10e   :  { %77 = vst.msk [vmem:[#allocation6] sm:$0x1] %vm76_vm3, %v75_v30 }
 0x10f   :  { %133 = shalt.err (!%p130_p9)
}
 0x110   :  { %87 = dma.vmem_to_hbm [thread:$0]  %s85_s2, 16, %s187_s3, [#allocation5]  }
 0x111   :  { %144 = dma.done.wait [#allocation5], 16  }
 0x112   :  { %145 = vsyncadd [#allocation5], 4294967280 }
 0x113   :  { %91 = vsyncpa [#allocation4], 1 }
 0x114   :  { %92 = vsyncpa [#allocation5], 1 }

</bundles_post_ra>
